<compile_context>
chip_gen: v7x
topology: tpu7x:2x2x1
jax: 0.10.0
libtpu: 0.0.40
codegen_flags: <defaults>
</compile_context>

<pallas_src>
import jax
import jax.numpy as jnp
from jax import lax
from jax.experimental import pallas as pl
from jax.experimental.pallas import tpu as pltpu


def _round_up(x, m):
    return (x + m - 1) // m * m


def _seq_aligned_attn_kernel(p_ref, q_ref, negmask_ref, w_ref, b_ref,
                             out_ref, qt_ref):
    # p_ref:       (1, TLp, D)      compute dtype (bf16 or f32)
    # q_ref:       (1, Lq_pad, D)   compute dtype (block resident across Lp tiles)
    # negmask_ref: (1, 1, Lq_pad)   f32 additive mask (0 valid, -1e30 masked/pad)
    # w_ref:       (D, D)           compute dtype, pre-transposed (x @ W)
    # b_ref:       (1, D)           f32 bias
    # out_ref:     (1, TLp, Lq_pad) f32
    # qt_ref:      (Lq_pad, D)      VMEM scratch: cached relu(q @ W + b)

    # Project q once per batch (first Lp tile of each batch).
    @pl.when(pl.program_id(1) == 0)
    def _():
        q_acc = jnp.dot(q_ref[0], w_ref[...],
                        preferred_element_type=jnp.float32)
        qt_ref[...] = jnp.maximum(q_acc + b_ref[...], 0.0).astype(qt_ref.dtype)

    # Project the current p tile (MXU, f32 accumulation).
    p_acc = jnp.dot(p_ref[0], w_ref[...], preferred_element_type=jnp.float32)
    p_t = jnp.maximum(p_acc + b_ref[...], 0.0).astype(p_ref.dtype)

    # scores[p, q] = sum_d p_t[p, d] * q_t[q, d]  — contract on D directly,
    # no transpose of the cached q_t.
    scores = lax.dot_general(
        p_t, qt_ref[...],
        dimension_numbers=(((1,), (1,)), ((), ())),
        preferred_element_type=jnp.float32,
    )

    # Additive mask: -1e30 on padded / masked q positions (broadcast over rows).
    scores = scores + negmask_ref[0]

    # Softmax over the (lane-dense, padded) q axis, in f32.
    m = jnp.max(scores, axis=-1, keepdims=True)
    e = jnp.exp(scores - m)
    s = jnp.sum(e, axis=-1, keepdims=True)
    out_ref[0] = e * pl.reciprocal(s, approx=True)


def sequence_aligned_attention(p, q, q_mask, weight, bias, *, use_bf16=True):
    """
    p:      (B, Lp, D) float32
    q:      (B, Lq, D) float32
    q_mask: (B, Lq)    1 = padding, 0 = valid (float/bool/int)
    weight: (D, D)     PyTorch nn.Linear weight, shape (out, in)
    bias:   (D,)
    returns (B, Lp, Lq) float32 attention weights
    """
    B, Lp, D = p.shape
    _, Lq, _ = q.shape
    compute_dtype = jnp.bfloat16 if use_bf16 else jnp.float32

    # Lane-dense last dim for scores / softmax / output stores.
    Lq_pad = _round_up(Lq, 128)

    # Lp tile: big enough to amortize per-grid-step overhead, small enough
    # that the double-buffered (TLp, Lq_pad) f32 output block stays <= ~8 MiB
    # (so total resident VMEM is well inside v7x's 64 MiB / the 32 MiB scoped
    # default on all generations).
    max_tlp_for_vmem = max(8, ((8 * 1024 * 1024) // (Lq_pad * 4)) // 8 * 8)
    TLp = min(512, _round_up(Lp, 8), max_tlp_for_vmem)
    Lp_pad = _round_up(Lp, TLp)
    n_lp = Lp_pad // TLp

    # Host-side prep: pad + cast.  Padded p rows are garbage rows that get
    # sliced off; padded q columns are force-masked below.
    p_pad = jnp.pad(p.astype(compute_dtype), ((0, 0), (0, Lp_pad - Lp), (0, 0)))
    q_pad = jnp.pad(q.astype(compute_dtype), ((0, 0), (0, Lq_pad - Lq), (0, 0)))

    mask_f = jnp.pad(q_mask.astype(jnp.float32),
                     ((0, 0), (0, Lq_pad - Lq)), constant_values=1.0)
    # Additive mask: 0 where valid, -1e30 where padded / masked.  Large finite
    # value (not -inf) avoids NaNs for fully-masked rows.
    neg_mask = jnp.where(mask_f > 0.5, jnp.float32(-1e30),
                         jnp.float32(0.0)).reshape(B, 1, Lq_pad)

    w_t = weight.T.astype(compute_dtype)          # (D_in, D_out) for x @ W
    b2 = bias.reshape(1, D).astype(jnp.float32)   # bias added in f32

    out = pl.pallas_call(
        _seq_aligned_attn_kernel,
        # Output kept f32; could be bf16 if the consumer tolerates it.
        out_shape=jax.ShapeDtypeStruct((B, Lp_pad, Lq_pad), jnp.float32),
        grid_spec=pltpu.PrefetchScalarGridSpec(
            num_scalar_prefetch=0,
            grid=(B, n_lp),
            in_specs=[
                pl.BlockSpec((1, TLp, D), lambda b, i: (b, i, 0)),
                pl.BlockSpec((1, Lq_pad, D), lambda b, i: (b, 0, 0)),
                pl.BlockSpec((1, 1, Lq_pad), lambda b, i: (b, 0, 0)),
                pl.BlockSpec((D, D), lambda b, i: (0, 0)),
                pl.BlockSpec((1, D), lambda b, i: (0, 0)),
            ],
            out_specs=pl.BlockSpec((1, TLp, Lq_pad), lambda b, i: (b, i, 0)),
            scratch_shapes=[pltpu.VMEM((Lq_pad, D), compute_dtype)],
        ),
        compiler_params=pltpu.CompilerParams(
            # Lp axis is "arbitrary": its tiles reuse the per-batch q_t scratch
            # computed at i == 0, so they must run sequentially on one core.
            # The batch axis remains megacore-parallel.
            dimension_semantics=("parallel", "arbitrary"),
            vmem_limit_bytes=40 * 1024 * 1024,
        ),
    )(p_pad, q_pad, neg_mask, w_t, b2)

    return out[:, :Lp, :Lq]


def _reference(p, q, q_mask, weight, bias):
    # Pure-JAX f32 reference mirroring the PyTorch forward.
    p_t = jax.nn.relu(p @ weight.T + bias)
    q_t = jax.nn.relu(q @ weight.T + bias)
    scores = jnp.einsum("bpd,bqd->bpq", p_t, q_t)
    scores = jnp.where(q_mask[:, None, :] > 0.5, -jnp.inf, scores)
    return jax.nn.softmax(scores, axis=-1)


if __name__ == "__main__":
    B, Lp, Lq, D = 2, 8, 8, 32  # proj_dim = 32 as in Config

    key = jax.random.PRNGKey(0)
    kp, kq, kw, kb = jax.random.split(key, 4)

    p = jax.random.normal(kp, (B, Lp, D), dtype=jnp.float32)
    q = jax.random.normal(kq, (B, Lq, D), dtype=jnp.float32)

    # nn.Linear(proj_dim, proj_dim)-shaped parameters.
    weight = jax.random.normal(kw, (D, D), dtype=jnp.float32) * 0.1
    bias = jax.random.normal(kb, (D,), dtype=jnp.float32) * 0.1

    # q_mask: 1 for padding, 0 for valid. Pad the last 3 positions of batch 1.
    q_mask = jnp.zeros((B, Lq), dtype=jnp.float32)
    q_mask = q_mask.at[1, Lq - 3:].set(1.0)

    ref = _reference(p, q, q_mask, weight, bias)

    # Default (bf16 MXU inputs, f32 accumulation / softmax / output).
    out_bf16 = jax.block_until_ready(
        sequence_aligned_attention(p, q, q_mask, weight, bias, use_bf16=True))
    # Full-f32 path for a tighter numerical check.
    out_f32 = jax.block_until_ready(
        sequence_aligned_attention(p, q, q_mask, weight, bias, use_bf16=False))

    assert out_bf16.shape == (B, Lp, Lq)
    assert out_f32.shape == (B, Lp, Lq)

    err_f32 = float(jnp.max(jnp.abs(out_f32 - ref)))
    err_bf16 = float(jnp.max(jnp.abs(out_bf16 - ref)))
    assert jnp.allclose(out_f32, ref, atol=5e-3, rtol=0.0), f"f32 max err {err_f32}"
    assert jnp.allclose(out_bf16, ref, atol=2e-2, rtol=0.0), f"bf16 max err {err_bf16}"
    # Each row of attention weights should sum to ~1.
    assert jnp.allclose(out_bf16.sum(-1), jnp.ones((B, Lp)), atol=1e-2)
    assert jnp.allclose(out_f32.sum(-1), jnp.ones((B, Lp)), atol=1e-2)

    print("KERNEL_OK")
</pallas_src>

<mosaic_0001>
module attributes {stable_mosaic.version = 11 : i64} {
  func.func @_seq_aligned_attn_kernel(%arg0: i32, %arg1: i32, %arg2: memref<1x8x32xbf16, #tpu.memory_space<vmem>>, %arg3: memref<1x128x32xbf16, #tpu.memory_space<vmem>>, %arg4: memref<1x1x128xf32, #tpu.memory_space<vmem>>, %arg5: memref<32x32xbf16, #tpu.memory_space<vmem>>, %arg6: memref<1x32xf32, #tpu.memory_space<vmem>>, %arg7: memref<1x8x128xf32, #tpu.memory_space<vmem>>, %arg8: memref<128x32xbf16, #tpu.memory_space<vmem>>) attributes {dimension_semantics = [#tpu.dimension_semantics<parallel>, #tpu.dimension_semantics<arbitrary>], iteration_bounds = array<i64: 2, 1>, scalar_prefetch = 0 : i64, scratch_operands = 1 : i64, tpu.core_type = #tpu.core_type<tc>, window_params = [{transform_indices = @transform_0, window_bounds = array<i64: 1, 8, 32>}, {transform_indices = @transform_1, window_bounds = array<i64: 1, 128, 32>}, {transform_indices = @transform_2, window_bounds = array<i64: 1, 1, 128>}, {pipeline_mode = #tpu.pipeline_mode<synchronous>, transform_indices = @transform_3, window_bounds = array<i64: 32, 32>}, {pipeline_mode = #tpu.pipeline_mode<synchronous>, transform_indices = @transform_4, window_bounds = array<i64: 1, 32>}, {transform_indices = @transform_5, window_bounds = array<i64: 1, 8, 128>}]} {
    %c0_i32 = arith.constant 0 : i32
    %0 = arith.cmpi eq, %arg1, %c0_i32 : i32
    %1 = arith.extui %0 : i1 to i32
    %c0_i32_0 = arith.constant 0 : i32
    %2 = arith.cmpi ne, %1, %c0_i32_0 : i32
    scf.if %2 {
      %c0_19 = arith.constant 0 : index
      %c0_20 = arith.constant 0 : index
      %c0_21 = arith.constant 0 : index
      %32 = vector.load %arg3[%c0_19, %c0_20, %c0_21] : memref<1x128x32xbf16, #tpu.memory_space<vmem>>, vector<1x128x32xbf16>
      %33 = vector.shape_cast %32 : vector<1x128x32xbf16> to vector<128x32xbf16>
      %c0_22 = arith.constant 0 : index
      %c0_23 = arith.constant 0 : index
      %34 = vector.load %arg5[%c0_22, %c0_23] : memref<32x32xbf16, #tpu.memory_space<vmem>>, vector<32x32xbf16>
      %cst_24 = arith.constant dense<0.000000e+00> : vector<128x32xf32>
      %35 = tpu.matmul %33, %34, %cst_24 {dimension_numbers = #tpu.dot_dimension_numbers<[1], [0], [0], [1], [0, 0, 1, 1], [], []>} : vector<128x32xbf16>, vector<32x32xbf16>, vector<128x32xf32> -> vector<128x32xf32>
      %c0_25 = arith.constant 0 : index
      %c0_26 = arith.constant 0 : index
      %36 = vector.load %arg6[%c0_25, %c0_26] : memref<1x32xf32, #tpu.memory_space<vmem>>, vector<1x32xf32>
      %37 = vector.broadcast %36 : vector<1x32xf32> to vector<128x32xf32>
      %38 = arith.addf %35, %37 : vector<128x32xf32>
      %cst_27 = arith.constant 0.000000e+00 : f32
      %39 = vector.broadcast %cst_27 : f32 to vector<128x32xf32>
      %40 = arith.maximumf %38, %39 : vector<128x32xf32>
      %41 = arith.truncf %40 : vector<128x32xf32> to vector<128x32xbf16>
      %c0_28 = arith.constant 0 : index
      %c0_29 = arith.constant 0 : index
      %42 = vector.load %arg8[%c0_28, %c0_29] : memref<128x32xbf16, #tpu.memory_space<vmem>>, vector<128x32xbf16>
      tpu.vector_store %arg8[%c0_28, %c0_29], %41 {strides = array<i32>} : memref<128x32xbf16, #tpu.memory_space<vmem>>, vector<128x32xbf16>,
    } else {
    }
    %c0 = arith.constant 0 : index
    %c0_1 = arith.constant 0 : index
    %c0_2 = arith.constant 0 : index
    %3 = vector.load %arg2[%c0, %c0_1, %c0_2] : memref<1x8x32xbf16, #tpu.memory_space<vmem>>, vector<1x8x32xbf16>
    %4 = vector.shape_cast %3 : vector<1x8x32xbf16> to vector<8x32xbf16>
    %c0_3 = arith.constant 0 : index
    %c0_4 = arith.constant 0 : index
    %5 = vector.load %arg5[%c0_3, %c0_4] : memref<32x32xbf16, #tpu.memory_space<vmem>>, vector<32x32xbf16>
    %cst = arith.constant dense<0.000000e+00> : vector<8x32xf32>
    %6 = tpu.matmul %4, %5, %cst {dimension_numbers = #tpu.dot_dimension_numbers<[1], [0], [0], [1], [0, 0, 1, 1], [], []>} : vector<8x32xbf16>, vector<32x32xbf16>, vector<8x32xf32> -> vector<8x32xf32>
    %c0_5 = arith.constant 0 : index
    %c0_6 = arith.constant 0 : index
    %7 = vector.load %arg6[%c0_5, %c0_6] : memref<1x32xf32, #tpu.memory_space<vmem>>, vector<1x32xf32>
    %8 = vector.broadcast %7 : vector<1x32xf32> to vector<8x32xf32>
    %9 = arith.addf %6, %8 : vector<8x32xf32>
    %cst_7 = arith.constant 0.000000e+00 : f32
    %10 = vector.broadcast %cst_7 : f32 to vector<8x32xf32>
    %11 = arith.maximumf %9, %10 : vector<8x32xf32>
    %12 = arith.truncf %11 : vector<8x32xf32> to vector<8x32xbf16>
    %c0_8 = arith.constant 0 : index
    %c0_9 = arith.constant 0 : index
    %13 = vector.load %arg8[%c0_8, %c0_9] : memref<128x32xbf16, #tpu.memory_space<vmem>>, vector<128x32xbf16>
    %cst_10 = arith.constant dense<0.000000e+00> : vector<8x128xf32>
    %14 = tpu.matmul %12, %13, %cst_10 {dimension_numbers = #tpu.dot_dimension_numbers<[1], [1], [0], [0], [0, 0, 1, 0], [], []>} : vector<8x32xbf16>, vector<128x32xbf16>, vector<8x128xf32> -> vector<8x128xf32>
    %c0_11 = arith.constant 0 : index
    %c0_12 = arith.constant 0 : index
    %c0_13 = arith.constant 0 : index
    %15 = vector.load %arg4[%c0_11, %c0_12, %c0_13] : memref<1x1x128xf32, #tpu.memory_space<vmem>>, vector<1x1x128xf32>
    %16 = vector.shape_cast %15 : vector<1x1x128xf32> to vector<1x128xf32>
    %17 = vector.broadcast %16 : vector<1x128xf32> to vector<8x128xf32>
    %18 = arith.addf %14, %17 : vector<8x128xf32>
    %cst_14 = arith.constant dense<0xFF800000> : vector<8xf32>
    %19 = vector.multi_reduction <maximumf>, %18, %cst_14 [1] : vector<8x128xf32> to vector<8xf32>
    %20 = vector.shape_cast %19 : vector<8xf32> to vector<8x1xf32>
    %21 = vector.broadcast %20 : vector<8x1xf32> to vector<8x128xf32>
    %22 = arith.subf %18, %21 : vector<8x128xf32>
    %23 = math.exp %22 : vector<8x128xf32>
    %cst_15 = arith.constant dense<0.000000e+00> : vector<8xf32>
    %24 = vector.multi_reduction <add>, %23, %cst_15 [1] : vector<8x128xf32> to vector<8xf32>
    %25 = vector.shape_cast %24 : vector<8xf32> to vector<8x1xf32>
    %26 = tpu.reciprocal %25 {approx = true} : vector<8x1xf32> -> vector<8x1xf32>
    %27 = vector.broadcast %26 : vector<8x1xf32> to vector<8x128xf32>
    %28 = arith.mulf %23, %27 : vector<8x128xf32>
    %c0_16 = arith.constant 0 : index
    %c0_17 = arith.constant 0 : index
    %c0_18 = arith.constant 0 : index
    %29 = vector.load %arg7[%c0_16, %c0_17, %c0_18] : memref<1x8x128xf32, #tpu.memory_space<vmem>>, vector<1x8x128xf32>
    %30 = vector.shape_cast %29 : vector<1x8x128xf32> to vector<8x128xf32>
    %31 = vector.shape_cast %28 : vector<8x128xf32> to vector<1x8x128xf32>
    tpu.vector_store %arg7[%c0_16, %c0_17, %c0_18], %31 {strides = array<i32>} : memref<1x8x128xf32, #tpu.memory_space<vmem>>, vector<1x8x128xf32>,
    return
  }
  func.func @transform_0(%arg0: i32, %arg1: i32) -> (i32, i32, i32) {
    %c0_i32 = arith.constant 0 : i32
    %c0_i32_0 = arith.constant 0 : i32
    return %arg0, %arg1, %c0_i32 : i32, i32, i32
  }
  func.func @transform_1(%arg0: i32, %arg1: i32) -> (i32, i32, i32) {
    %c0_i32 = arith.constant 0 : i32
    %c0_i32_0 = arith.constant 0 : i32
    %c0_i32_1 = arith.constant 0 : i32
    return %arg0, %c0_i32, %c0_i32_0 : i32, i32, i32
  }
  func.func @transform_2(%arg0: i32, %arg1: i32) -> (i32, i32, i32) {
    %c0_i32 = arith.constant 0 : i32
    %c0_i32_0 = arith.constant 0 : i32
    %c0_i32_1 = arith.constant 0 : i32
    return %arg0, %c0_i32, %c0_i32_0 : i32, i32, i32
  }
  func.func @transform_3(%arg0: i32, %arg1: i32) -> (i32, i32) {
    %c0_i32 = arith.constant 0 : i32
    %c0_i32_0 = arith.constant 0 : i32
    %c0_i32_1 = arith.constant 0 : i32
    return %c0_i32, %c0_i32_0 : i32, i32
  }
  func.func @transform_4(%arg0: i32, %arg1: i32) -> (i32, i32) {
    %c0_i32 = arith.constant 0 : i32
    %c0_i32_0 = arith.constant 0 : i32
    %c0_i32_1 = arith.constant 0 : i32
    return %c0_i32, %c0_i32_0 : i32, i32
  }
  func.func @transform_5(%arg0: i32, %arg1: i32) -> (i32, i32, i32) {
    %c0_i32 = arith.constant 0 : i32
    %c0_i32_0 = arith.constant 0 : i32
    return %arg0, %arg1, %c0_i32 : i32, i32, i32
  }
}

</mosaic_0001>

<bundles_post_ra>
// kernel: tpu_custom_call.1
= control target key start
LH: loop header
LB: loop body
LE: loop exit
PB: predicated region body
PF: predicated region fallthrough
CT: control target
= control target key end

     0   :  { %10 = vsyncpa [#allocation4], 0  ;;  %s1278_s0 = inlined_call_operand.vmem [shape: bf16[2,8,32], index: 0, kind: input, shape index: {}]   ;;  %s1279_s1 = inlined_call_operand.vmem [shape: bf16[2,128,32], index: 1, kind: input, shape index: {}]   ;;  %s1280_s2 = inlined_call_operand.vmem [shape: f32[2,1,128], index: 2, kind: input, shape index: {}]   ;;  %s1281_s3 = inlined_call_operand.vmem [shape: bf16[32,32], index: 3, kind: input, shape index: {}]   ;;  %s1282_s4 = inlined_call_operand.vmem [shape: f32[1,32], index: 4, kind: input, shape index: {}]   ;;  %s1283_s5 = inlined_call_operand.hbm [shape: f32[2,8,128], index: 5, kind: output, shape index: {}]  }
   0x1   :  { %12 = vsyncpa [#allocation4 + $0x1], 0  ;;  %s1081_s18 = smov 0   ;;  %s1083_s19 = smov 0  }
   0x2   :  { %s1085_s20 = smov 0   ;;  %s1087_s21 = smov 0  }
   0x3   :  { %s1089_s22 = smov 0   ;;  %s1091_s23 = smov 0  }
   0x4 LB: > { %s786_s24 = sadd.s32 4294967295, %s1046_s23   ;;  %s787_s25 = sadd.s32 4294967294, %s1046_s23   ;;  %s1046_s23 = sphi %s1091_s23, %s18_s23   ;;  %s1042_s22 = sphi %s1089_s22, %s1290_s22   ;;  %s1038_s21 = sphi %s1087_s21, %s1289_s21   ;;  %s1034_s20 = sphi %s1085_s20, %s1288_s20   ;;  %s1030_s19 = sphi %s1083_s19, %s1287_s19   ;;  %s1026_s18 = sphi %s1081_s18, %s1286_s18  }
   0x5   : > { %s30_s26 = sadd.s32 1, %s1042_s22  ;;  %s161_s27 = sadd.s32 1, %s1034_s20 }
   0x6   : > { %p32_p0 = scmp.ge.s32.totalorder %s30_s26, 2  ;;  %p171_p1 = scmp.ne.s32.totalorder %s1034_s20, %s1030_s19 }
   0x7   : > { %p172_p2 = scmp.eq.s32.totalorder %s786_s24, 1  ;;  %p177_p3 = scmp.ne.s32.totalorder %s1030_s19, %s1026_s18 }
   0x8   : > { %s1292_s26 = smov (%p32_p0, %s30_s26), 0  ;;  %p178_p5 = scmp.eq.s32.totalorder %s787_s25, 1 }
   0x9   : > { %p1121_p4 = por %p172_p2, %p171_p1  ;;  %s156_s29 = ssub.s32 %s1042_s22, %s1292_s26 }
   0xa   : > { %p790_p6 = scmp.ge.s32.totalorder %s1046_s23, 1  ;;  %p159_p7 = scmp.eq.s32.totalorder %s156_s29, 0 }
   0xb   : > { %p1128_p8 = por %p178_p5, %p177_p3  ;;  %p226_p9 = scmp.lt.s32.totalorder %s1046_s23, 3 }
   0xc   : > { %s1134_s6 = scalar_select %p159_p7, %s1034_s20, %s161_s27  }
   0xd   : > { %p227_p10 = pnand %p790_p6, %p226_p9 }
   0xe   : > { %v952_v0 = vld [vmem:[%s1281_s3] sm:$0xff] (!%p227_p10)   ;;  %p264_p11 = scmp.lt.s32.totalorder (!%p227_p10), %s1038_s21, 1  ;;  %v953_v1 = vld [vmem:[%s1281_s3 + $0x8] sm:$0xff] (!%p227_p10)   ;;  %v1048_v2 = vmov (!%p227_p10), 0.0   ;;  %vm1049_vm0 = vmmov (!%p227_p10), 0   ;;  %vm363_vm1 = vcmask (!%p227_p10), 261120  }
   0xf   : > { %230 = sbr.rel (%p227_p10) target bundleno = 861 (0x35d), region = 40  ;;  %847 = vmatprep.subr.bf16.mxu1 (!%p227_p10), %v952_v0  ;;  %875 = vmatprep.subr.bf16.mxu0 (!%p227_p10), %v1048_v2  ;;  %v960_v3 = vld [vmem:[%s1281_s3] sm:$0xff] (!%p227_p10)   ;;  %v963_v7 = vld [vmem:[%s1281_s3 + $0x8] sm:$0xff] (!%p227_p10)  }
  0x10   : > { %848 = vmatpush3.bf16.msra.mxu1 (!%p227_p10), %v952_v0  ;;  %891 = vmatprep.mubr.msk.bf16.mxu0 (!%p227_p10), %vm1049_vm0, %v1048_v2  ;;  %v1179_v14 = vld [vmem:[%s1282_s4] ss:$0 sm:$0xff] (!%p227_p10) }
  0x11   : > { %849 = vmatprep.subr.bf16.mxu1 (!%p227_p10), %v953_v1 }
  0x14   : > { %850 = vmatpush3.bf16.msra.mxu1 (!%p227_p10), %v953_v1 }
  0x15   : > { %867 = vmatprep.subr.bf16.mxu1 (!%p227_p10), %v1048_v2 }
  0x16   : > { %s1144_s11 = scalar_select %p264_p11, %s1038_s21, 1 }
  0x18   : > { %s824_s12 = sshll.u32 %s1144_s11, 6  ;;  %s792_s27 = sshll.u32 %s1144_s11, 2 }
  0x19   : > { %s275_s15 = scalar_lea.vmem %s1279_s1, %s824_s12  ;;  %s270_s8 = scalar_lea.vmem %s1278_s0, %s792_s27 }
  0x1a   : > { %v954_v4 = vld [vmem:[%s275_s15] sm:$0xff]   ;;  %v955_v5 = vld [vmem:[%s275_s15 + $0x8] sm:$0xff]   ;;  %v956_v6 = vld [vmem:[%s275_s15 + $0x10] sm:$0xff]   ;;  %s278_s14 = scalar_lea.vmem %s1280_s2, %s1144_s11  ;;  %s821_s11 = sshll.u32 %s1038_s21, 7 }
  0x1b   : > { %851 = vmatprep.mubr.msk.bf16.mxu1 %vm363_vm1, %v954_v4  ;;  %v957_v8 = vld [vmem:[%s275_s15 + $0x18] sm:$0xff]   ;;  %v958_v9 = vld [vmem:[%s275_s15 + $0x20] sm:$0xff]   ;;  %v959_v10 = vld [vmem:[%s275_s15 + $0x28] sm:$0xff]   ;;  %s1231_s29 = scalar_lea.hbm %s1283_s5, %s821_s11  ;;  %s1050_s21 = smov [#allocation3]  }
  0x1c   : > { %852 = vmatmul.mubr.msk.bf16.vlgmr.msra.gmra.mrb[0].mxu1 %vm363_vm1, %v955_v5  ;;  %v961_v11 = vld [vmem:[%s275_s15 + $0x30] sm:$0xff]   ;;  %v962_v12 = vld [vmem:[%s275_s15 + $0x38] sm:$0xff]   ;;  %v517_v13 = vld [vmem:[%s270_s8] sm:$0xf]  ;;  %s261_s15 = sand.u32 1, %s1030_s19   ;;  %s972_s9 = sshll.u32 %s1050_s21, 4  ;;  %s973_s9 = int_to_ptr.vmem [resolvable:$false] %s972_s9 }
  0x1d   : > { %855 = vmatprep.mubr.msk.bf16.mxu1 %vm363_vm1, %v956_v6  ;;  %868 = vmatpush3.bf16.msra.mxu1 %v960_v3  ;;  %s791_s16 = sshll.u32 %s261_s15, 3  ;;  %s680_s7 = scalar_lea.sflag [#allocation4], %s261_s15 }
  0x1e   : > { %869 = vmatprep.subr.bf16.mxu1 %v1048_v2  ;;  %s263_s17 = scalar_lea.vmem [#allocation3], %s791_s16  ;;  %s974_s10 = scalar_lea.vmem %s973_s9, 256 }
  0x1f   : > { %s694_s24 = sshll.u32 %s263_s17, 4  ;;  %s1233_s24 = int_to_ptr.vmem [resolvable:$true] %s694_s24 }
  0x20   : > { %s968_s8 = scalar_lea.vmem %s1233_s24, 128  ;;  %p975_p1 = scmp.lt.s32.totalorder %s1233_s24, %s973_s9 }
  0x21   : > { %870 = vmatpush3.bf16.msra.mxu1 %v963_v7  ;;  %p969_p12 = scmp.ne.s32.totalorder %s1233_s24, %s968_s8  ;;  %p976_p2 = scmp.lt.s32.totalorder %s974_s10, %s968_s8 }
  0x23   : > { %p970_p13 = pnand %p969_p12, %p1121_p4  ;;  %p977_p3 = por %p976_p2, %p975_p1 }
  0x24   : > { %856 = vmatmul.mubr.msk.bf16.gmra.mrb[4].mxu1 %vm363_vm1, %v957_v8 }
  0x25   : > { %859 = vmatprep.mubr.msk.bf16.mxu1 %vm363_vm1, %v958_v9  ;;  %p971_p0 = pneg %p970_p13 }
  0x27   : > { %p978_p5 = pnand %p977_p3, %p971_p0 }
  0x2c   : > { %860 = vmatmul.mubr.msk.bf16.gmra.mrb[8].mxu1 %vm363_vm1, %v959_v10 }
  0x2d   : > { %863 = vmatprep.mubr.msk.bf16.mxu1 %vm363_vm1, %v961_v11 }
  0x34   : > { %864 = vmatmul.mubr.msk.bf16.gmra.mrb[12].mxu1 %vm363_vm1, %v962_v12 }
  0x35   : > { %871 = vmatprep.mubr.msk.bf16.mxu1 %vm1049_vm0, %v1048_v2 }
  0x3c   : > { %872 = vmatmul.mubr.msk.bf16.vlgmr.msra.gmra.mrb[16].mxu1 %vm363_vm1, %v517_v13 }
  0xef   : > { %v853_v15 = vpop.f32.mrb[0].mxu1 }
  0xf0   : > { %v431_v16 = vadd.f32 %v853_v15, %v1179_v14  ;;  %v422_v17 = vpop.f32.mrb[1].mxu1 }
  0xf1   : > { %v423_v18 = vadd.f32 %v1179_v14, %v422_v17  ;;  %v854_v19 = vpop.f32.mrb[2].mxu1 }
  0xf2   : > { %v434_v20 = vadd.f32 %v854_v19, %v1179_v14  ;;  %v425_v21 = vpop.f32.mrb[3].mxu1  ;;  %v487_v23 = vmax.f32 %v431_v16, 0.0 }
  0xf3   : > { %v426_v22 = vadd.f32 %v1179_v14, %v425_v21  ;;  %v485_v25 = vmax.f32 %v423_v18, 0.0 }
  0xf4   : > { %v488_v24 = vmax.f32 %v434_v20, 0.0 }
  0xf5   : > { %v486_v26 = vmax.f32 %v426_v22, 0.0 }
  0xf6   : > { %v502_v27 = vpack.c.bf16 %v488_v24, %v487_v23 }
  0xf7   : > { %v501_v28 = vpack.c.bf16 %v486_v26, %v485_v25  ;;  %v857_v29 = vpop.f32.mrb[4].mxu1 }
  0xf8   : > { %510 = vst.msk [vmem:[#allocation2 + $0x8] sm:$0xff] %vm363_vm1, %v502_v27  ;;  %v447_v30 = vadd.f32 %v857_v29, %v1179_v14  ;;  %v438_v31 = vpop.f32.mrb[5].mxu1 }
  0xf9   : > { %509 = vst.msk [vmem:[#allocation2] sm:$0xff] %vm363_vm1, %v501_v28  ;;  %v439_v32 = vadd.f32 %v1179_v14, %v438_v31  ;;  %v858_v33 = vpop.f32.mrb[6].mxu1  ;;  %v818_v31 = vld [vmem:[%s278_s14] ss:$0 sm:$0xff] }
  0xfa   : > { %v491_v34 = vmax.f32 %v447_v30, 0.0  ;;  %v450_v35 = vadd.f32 %v858_v33, %v1179_v14  ;;  %v441_v36 = vpop.f32.mrb[7].mxu1 }
  0xfb   : > { %v489_v37 = vmax.f32 %v439_v32, 0.0  ;;  %v442_v38 = vadd.f32 %v1179_v14, %v441_v36 }
  0xfc   : > { %v492_v39 = vmax.f32 %v450_v35, 0.0 }
  0xfd   : > { %v490_v40 = vmax.f32 %v442_v38, 0.0 }
  0xfe   : > { %v504_v41 = vpack.c.bf16 %v492_v39, %v491_v34 }
  0xff   : > { %v503_v42 = vpack.c.bf16 %v490_v40, %v489_v37  ;;  %v861_v43 = vpop.f32.mrb[8].mxu1  ;;  %v588_v57 = vld [vmem:[#allocation2 + $0x8] sm:$0xff] }
 0x100   : > { %512 = vst.msk [vmem:[#allocation2 + $0x18] sm:$0xff] %vm363_vm1, %v504_v41  ;;  %v587_v44 = vld [vmem:[#allocation2] sm:$0xff]  ;;  %v463_v45 = vadd.f32 %v861_v43, %v1179_v14  ;;  %v454_v46 = vpop.f32.mrb[9].mxu1  ;;  %v609_v63 = vsel %vm363_vm1, %v588_v57, 0 }
 0x101   : > { %511 = vst.msk [vmem:[#allocation2 + $0x10] sm:$0xff] %vm363_vm1, %v503_v42  ;;  %v606_v47 = vsel %vm363_vm1, %v587_v44, 0  ;;  %v455_v48 = vadd.f32 %v1179_v14, %v454_v46  ;;  %v862_v49 = vpop.f32.mrb[10].mxu1 }
 0x102   : > { %876 = vmatpush3.bf16.xpose.msra.mxu0 %v606_v47  ;;  %v495_v50 = vmax.f32 %v463_v45, 0.0  ;;  %v466_v51 = vadd.f32 %v862_v49, %v1179_v14  ;;  %v457_v52 = vpop.f32.mrb[11].mxu1 }
 0x103   : > { %877 = vmatprep.subr.bf16.mxu0 %v1048_v2  ;;  %v493_v53 = vmax.f32 %v455_v48, 0.0  ;;  %v458_v54 = vadd.f32 %v1179_v14, %v457_v52 }
 0x104   : > { %v496_v55 = vmax.f32 %v466_v51, 0.0 }
 0x105   : > { %v494_v56 = vmax.f32 %v458_v54, 0.0 }
 0x106   : > { %v506_v58 = vpack.c.bf16 %v496_v55, %v495_v50 }
 0x107   : > { %v505_v59 = vpack.c.bf16 %v494_v56, %v493_v53  ;;  %v865_v60 = vpop.f32.mrb[12].mxu1  ;;  %v590_v20 = vld [vmem:[#allocation2 + $0x18] sm:$0xff] }
 0x108   : > { %514 = vst.msk [vmem:[#allocation2 + $0x28] sm:$0xff] %vm363_vm1, %v506_v58  ;;  %v479_v61 = vadd.f32 %v865_v60, %v1179_v14  ;;  %v470_v62 = vpop.f32.mrb[13].mxu1  ;;  %v589_v10 = vld [vmem:[#allocation2 + $0x10] sm:$0xff]  ;;  %v615_v21 = vsel %vm363_vm1, %v590_v20, 0 }
 0x109   : > { %513 = vst.msk [vmem:[#allocation2 + $0x20] sm:$0xff] %vm363_vm1, %v505_v59  ;;  %v471_v0 = vadd.f32 %v1179_v14, %v470_v62  ;;  %v866_v1 = vpop.f32.mrb[14].mxu1  ;;  %v612_v17 = vsel %vm363_vm1, %v589_v10, 0 }
 0x10a   : > { %878 = vmatpush3.bf16.xpose.msra.mxu0 %v609_v63  ;;  %v499_v3 = vmax.f32 %v479_v61, 0.0  ;;  %v482_v4 = vadd.f32 %v866_v1, %v1179_v14  ;;  %v473_v5 = vpop.f32.mrb[15].mxu1 }
 0x10b   : > { %879 = vmatprep.subr.bf16.mxu0 %v1048_v2  ;;  %v497_v6 = vmax.f32 %v471_v0, 0.0  ;;  %v474_v7 = vadd.f32 %v1179_v14, %v473_v5 }
 0x10c   : > { %v500_v8 = vmax.f32 %v482_v4, 0.0 }
 0x10d   : > { %v498_v9 = vmax.f32 %v474_v7, 0.0 }
 0x10e   : > { %v508_v11 = vpack.c.bf16 %v500_v8, %v499_v3 }
 0x10f   : > { %v507_v12 = vpack.c.bf16 %v498_v9, %v497_v6  ;;  %v579_v13 = vpop.f32.mrb[16].mxu1 }
 0x110   : > { %516 = vst.msk [vmem:[#allocation2 + $0x38] sm:$0xff] %vm363_vm1, %v508_v11  ;;  %v580_v15 = vadd.f32 %v1179_v14, %v579_v13  ;;  %v873_v16 = vpop.f32.mrb[17].mxu1  ;;  %v591_v22 = vld [vmem:[#allocation2 + $0x20] sm:$0xff]  ;;  %v592_v14 = vld [vmem:[#allocation2 + $0x28] sm:$0xff] }
 0x111   : > { %515 = vst.msk [vmem:[#allocation2 + $0x30] sm:$0xff] %vm363_vm1, %v507_v12  ;;  %v582_v18 = vpop.f32.mrb[18].mxu1  ;;  %v618_v23 = vsel %vm363_vm1, %v591_v22, 0  ;;  %v621_v24 = vsel %vm363_vm1, %v592_v14, 0 }
 0x112   : > { %880 = vmatpush3.bf16.xpose.msra.mxu0 %v612_v17  ;;  %v874_v19 = vpop.f32.mrb[19].mxu1  ;;  %v585_v28 = vmax.f32 %v580_v15, 0.0 }
 0x113   : > { %881 = vmatprep.subr.bf16.mxu0 %v1048_v2 }
 0x114   : > { %v586_v30 = vpack.c.bf16 %v585_v28, %v585_v28 }
 0x117   : > { %v594_v27 = vld [vmem:[#allocation2 + $0x38] sm:$0xff] }
 0x118   : > { %v593_v25 = vld [vmem:[#allocation2 + $0x30] sm:$0xff]  ;;  %v627_v29 = vsel %vm363_vm1, %v594_v27, 0 }
 0x119   : > { %v624_v26 = vsel %vm363_vm1, %v593_v25, 0 }
 0x11a   : > { %882 = vmatpush3.bf16.xpose.msra.mxu0 %v615_v21 }
 0x11b   : > { %883 = vmatprep.subr.bf16.mxu0 %v1048_v2 }
 0x122   : > { %884 = vmatpush3.bf16.xpose.msra.mxu0 %v618_v23 }
 0x123   : > { %885 = vmatprep.subr.bf16.mxu0 %v1048_v2 }
 0x12a   : > { %886 = vmatpush3.bf16.xpose.msra.mxu0 %v621_v24 }
 0x12b   : > { %887 = vmatprep.subr.bf16.mxu0 %v1048_v2 }
 0x132   : > { %888 = vmatpush3.bf16.xpose.msra.mxu0 %v624_v26 }
 0x133   : > { %889 = vmatprep.subr.bf16.mxu0 %v1048_v2 }
 0x13a   : > { %890 = vmatpush3.bf16.xpose.msra.mxu0 %v627_v29 }
 0x141   : > { %892 = vmatmul.mubr.msk.bf16.vlgmr.msra.gmra.mrb[0].mxu0 %vm363_vm1, %v586_v30 }
 0x214   : > { %v663_v32 = vpop.f32.mrb[0].mxu0 }
 0x215   : > { %v664_v33 = vadd.f32 %v818_v31, %v663_v32  ;;  %v893_v34 = vpop.f32.mrb[1].mxu0 }
 0x216   : > { %v666_v35 = vpop.f32.mrb[2].mxu0 }
 0x217   : > { %669 = vmax.xlane.f32.xlu0 %v664_v33  ;;  %v894_v2 = vpop.f32.mrb[3].mxu0 }
 0x2a4   : > { %v670_v36 = vpop.xlane.xlu0 %669 }
 0x2a5   : > { %v671_v37 = vsub.f32 %v664_v33, %v670_v36 }
 0x2a7   : > { %v672_v38 = vmul.f32 1.442695, %v671_v37 }
 0x2a9   : > { %964 = vpow2.f32 %v672_v38 }
 0x2b3   : > { %v965_v39 = vpop.eup %964 }
 0x2b4   : > { %674 = vadd.xlane.f32.xlu0 %v965_v39 }
 0x341   : > { %v675_v40 = vpop.xlane.xlu0 %674 }
 0x342   : > { %966 = vrcp.f32 %v675_v40 }
 0x34c   : > { %v967_v41 = vpop.eup %966 }
 0x34d   : > { %v677_v42 = vmul.f32 %v967_v41, %v965_v39 }
 0x34f   : > { %678 = vst [vmem:[%s263_s17] sm:$0xff] %v677_v42 }
 0x350   : > { %981 = shalt.err (!%p978_p5)
}
 0x351   : > { %s982_s12 = scalar_lea.hbm %s1231_s29, 128  ;;  %s986_s15 = scalar_lea.hbm %s1283_s5, 256 }
 0x352   : > { %p983_p6 = scmp.ne.s32.totalorder %s1231_s29, %s982_s12  ;;  %p987_p10 = scmp.lt.u32.totalorder %s1231_s29, %s1283_s5 }
 0x353   : > { %p988_p11 = scmp.lt.u32.totalorder %s986_s15, %s982_s12  ;;  %p990_p13 = scmp.lt.u32.totalorder %s982_s12, %s1231_s29 }
 0x354   : > { %p984_p7 = pnand %p983_p6, %p1121_p4 }
 0x355   : > { %p989_p12 = por %p988_p11, %p987_p10 }
 0x356   : > { %p985_p9 = pneg %p984_p7 }
 0x357   : > { %p991_p0 = por %p990_p13, %p989_p12 }
 0x359   : > { %p992_p1 = pnand %p991_p0, %p985_p9 }
 0x35b   : > { %995 = shalt.err (!%p992_p1)
}
 0x35c   : > { %895 = dma.vmem_to_hbm [thread:$0]  (%p1121_p4), %s1233_s24, 128, %s1231_s29, %s680_s7  }
 0x35d PF: > { %p901_p2 = scmp.ge.s32.totalorder %s1046_s23, 2  ;;  %s706_s17 = sand.u32 1, %s1026_s18  }
 0x35e   : > { %s707_s25 = scalar_lea.sflag [#allocation4], %s706_s17 }
 0x35f   : > { %p898_p3 = pnand %p901_p2, %p1128_p8 }
 0x361   : > { %1021 = dma.done.wait (!%p898_p3), %s707_s25, 128  }
 0x362   : > { %1023 = vsyncadd (!%p898_p3), %s707_s25, 4294967168  ;;  %s18_s23 = sadd.s32 1, %s1046_s23   ;;  %s1286_s18 = smov %s1030_s19 }
 0x363   : > { %p15_p5 = scmp.ge.s32.totalorder %s18_s23, 4   ;;  %s1287_s19 = smov %s1034_s20 }
 0x364   : > { %s1288_s20 = smov %s1134_s6  ;;  %s1289_s21 = smov %s1042_s22 }
 0x365   : > { %s1290_s22 = smov %s1292_s26  ;;  %17 = sbr.rel (!%p15_p5) target bundleno = 4 (0x4), region = 85 }
 0x36c   :  { %712 = vsyncpa [#allocation4], 1 }
 0x36d   :  { %714 = vsyncpa [#allocation4 + $0x1], 1 }

</bundles_post_ra>
